<compile_context>
chip_gen: v7x
topology: tpu7x:2x2x1
jax: 0.10.0
libtpu: 0.0.40
codegen_flags: <defaults>
</compile_context>

<pallas_src>
import jax
import jax.numpy as jnp
import numpy as np
from jax import lax
from jax.experimental import pallas as pl
from jax.experimental.pallas import tpu as pltpu

FACTORS = (1.0, 0.7, 0.6)
LANE = 128        # TPU lane width (last dim of every block)
TM_ROWS = 4096    # sublane rows per grid step -> 4096*128 = 524288 elems/step


def _make_kernel(tm, rows, tiles):
    """Kernel specialized on static tile geometry (tm rows/tile, `rows` valid)."""
    rows_in_last = rows - (tiles - 1) * tm      # valid rows in the last tile
    needs_tail_mask = rows_in_last != tm        # last block partial -> DMA garbage

    def kernel(pred_ref, tgt_ref, bits_ref, out_ref, acc_ref):
        # pred_ref : (tm, 128) f32   predictions
        # tgt_ref  : (tm, 128) f32   raw targets (log1p applied in-kernel)
        # bits_ref : (tm, 128) int8  bit g set <=> element belongs to group g
        # out_ref  : (1, 8)    f32 SMEM  [num0, num1, num2, 0, 0, 0, 0, 0]
        # acc_ref  : (3, 8, 128) f32 VMEM vreg-shaped accumulators
        c = pl.program_id(0)

        @pl.when(c == 0)
        def _init():
            acc_ref[...] = jnp.zeros_like(acc_ref)

        pred = pred_ref[...]
        y = jnp.log1p(tgt_ref[...])
        mu = jnp.minimum(jnp.exp(6.0 * (y - 3.0)) + 1.0, 5.0)
        se = mu * (y - pred) ** 2                              # (tm, 128)

        bits = bits_ref[...]                                   # int8, no widen
        if needs_tail_mask:
            # Zero group bits for garbage rows of the (partial) last block so
            # NaN/Inf from uninitialized VMEM is never selected.
            row = lax.broadcasted_iota(jnp.int32, (tm, LANE), 0)
            row_limit = jnp.where(c == tiles - 1, rows_in_last, tm)
            bits = jnp.where(row < row_limit, bits, jnp.zeros_like(bits))

        for g in range(3):
            m = (bits & (1 << g)) != 0                         # bool mask
            sel = jnp.where(m, se, 0.0)                        # select, no mul
            # VALU-only tree reduction to a single vreg (no XLU per tile).
            part = jnp.sum(sel.reshape(tm // 8, 8, LANE), axis=0)   # (8, 128)
            acc_ref[g] = acc_ref[g] + part

        @pl.when(c == pl.num_programs(0) - 1)
        def _finalize():
            for g in range(3):
                out_ref[0, g] = jnp.sum(acc_ref[g])            # one XLU reduce
            for j in range(3, 8):
                out_ref[0, j] = jnp.float32(0.0)

    return kernel


def balanced_mse_loss(pred, actual, *, tm_rows=TM_ROWS):
    """pred: (N,) or (N,1); actual: (N, C) with C >= 4 (PyTorch convention).

    Matches BalancedMSELoss(scale=True): an empty group yields NaN (mean of 0
    elements), exactly like the PyTorch module.
    """
    pred = jnp.asarray(pred, jnp.float32).reshape(-1)
    actual = jnp.asarray(actual, jnp.float32)
    n = pred.shape[0]

    # One fused XLA pass over `actual`: target column, packed int8 group bits,
    # and the three group counts (denominators -- kept out of the hot loop).
    # TODO(synk): emit this packed, channel-separated layout upstream (or use
    # CompilerParams(allow_input_fusion=...)) so the 16*N-byte read of
    # `actual` disappears from the loss step entirely.
    tgt = actual[:, 0]
    m = actual[:, 1:4] == 1.0
    bits = (m[:, 0].astype(jnp.int8)
            | (m[:, 1].astype(jnp.int8) << 1)
            | (m[:, 2].astype(jnp.int8) << 2))
    cnt = jnp.sum(m, axis=0).astype(jnp.float32)               # (3,)

    rows = pl.cdiv(n, LANE)
    if rows <= tm_rows:
        # Single full-extent tile; round rows to a multiple of 8 so the
        # in-kernel (tm/8, 8, 128) tree reduction is exact.
        tm = ((rows + 7) // 8) * 8
        rows_pad = tm
    else:
        tm = max(32, (tm_rows // 32) * 32)    # multiple of 32 (int8 tiling)
        rows_pad = rows                        # ragged tail masked in-kernel
    tiles = pl.cdiv(rows_pad, tm)
    n_pad = rows_pad * LANE

    def _as2d(x):
        if n_pad != n:                         # no-op copy when already aligned
            x = jnp.pad(x, (0, n_pad - n))
        return x.reshape(rows_pad, LANE)

    pred2d, tgt2d, bits2d = _as2d(pred), _as2d(tgt), _as2d(bits)

    row_map = lambda c: (c, 0)
    partials = pl.pallas_call(
        _make_kernel(tm, rows_pad, tiles),
        out_shape=jax.ShapeDtypeStruct((1, 8), jnp.float32),
        grid_spec=pltpu.PrefetchScalarGridSpec(
            num_scalar_prefetch=0,
            grid=(tiles,),
            in_specs=[
                pl.BlockSpec((tm, LANE), row_map),   # pred
                pl.BlockSpec((tm, LANE), row_map),   # raw targets
                pl.BlockSpec((tm, LANE), row_map),   # packed int8 masks
            ],
            out_specs=pl.BlockSpec((1, 8), lambda c: (0, 0),
                                   memory_space=pltpu.SMEM),
            scratch_shapes=[pltpu.VMEM((3, 8, LANE), jnp.float32)],
        ),
        compiler_params=pltpu.CompilerParams(
            dimension_semantics=("arbitrary",),
            vmem_limit_bytes=32 * 1024 * 1024,
        ),
        cost_estimate=pl.CostEstimate(
            flops=20 * n, transcendentals=2 * n, bytes_accessed=9 * n),
    )(pred2d, tgt2d, bits2d)

    num = partials[0, 0:3]                                     # (3,)
    return jnp.sum(jnp.asarray(FACTORS, jnp.float32) * num / cnt)


def _reference_loss(pred, actual):
    """Pure-JAX reference matching the PyTorch module semantics."""
    pred = jnp.asarray(pred, jnp.float32).reshape(-1)
    actual = jnp.asarray(actual, jnp.float32)
    y = jnp.log1p(actual[:, 0])
    mu = jnp.minimum(jnp.exp(6.0 * (y - 3.0)) + 1.0, 5.0)
    se = mu * (y - pred) ** 2
    total = 0.0
    for g, f in enumerate(FACTORS):
        m = (actual[:, g + 1] == 1.0).astype(jnp.float32)
        total = total + f * jnp.sum(se * m) / jnp.sum(m)
    return total


def _make_inputs(key, n):
    k1, k2, k3 = jax.random.split(key, 3)
    pred = jax.random.normal(k1, (n,), dtype=jnp.float32)
    targets = jax.random.uniform(k2, (n,), dtype=jnp.float32,
                                 minval=0.0, maxval=4.0)
    masks = jax.random.bernoulli(k3, 0.5, (n, 3)).astype(jnp.float32)
    # guarantee each group is non-empty (PyTorch would NaN on empty groups)
    masks = masks.at[0, 0].set(1.0).at[1, 1].set(1.0).at[2, 2].set(1.0)
    actual = jnp.concatenate([targets[:, None], masks], axis=1)  # (n, 4)
    return pred, actual


if __name__ == "__main__":
    key = jax.random.PRNGKey(0)
    ka, kb, kc = jax.random.split(key, 3)

    # (n, tm_rows override): lane-aligned, ragged, and a multi-tile case with
    # a partial last block to exercise the in-kernel tail masking.
    cases = ((ka, 256, TM_ROWS), (kb, 300, TM_ROWS), (kc, 5200, 32))
    for k, n, tmr in cases:
        pred, actual = _make_inputs(k, n)
        loss = jax.block_until_ready(balanced_mse_loss(pred, actual, tm_rows=tmr))
        ref = jax.block_until_ready(_reference_loss(pred, actual))
        assert np.allclose(np.asarray(loss), np.asarray(ref),
                           rtol=1e-5, atol=1e-5), (n, float(loss), float(ref))

    print("KERNEL_OK")
</pallas_src>

<mosaic_0001>
module attributes {stable_mosaic.version = 11 : i64} {
  func.func @kernel(%arg0: i32, %arg1: memref<8x128xf32, #tpu.memory_space<vmem>>, %arg2: memref<8x128xf32, #tpu.memory_space<vmem>>, %arg3: memref<8x128xi8, #tpu.memory_space<vmem>>, %arg4: memref<1x8xf32, #tpu.memory_space<smem>>, %arg5: memref<3x8x128xf32, #tpu.memory_space<vmem>>) attributes {dimension_semantics = [#tpu.dimension_semantics<arbitrary>], iteration_bounds = array<i64: 1>, scalar_prefetch = 0 : i64, scratch_operands = 1 : i64, tpu.core_type = #tpu.core_type<tc>, window_params = [{transform_indices = @transform_0, window_bounds = array<i64: 8, 128>}, {transform_indices = @transform_1, window_bounds = array<i64: 8, 128>}, {transform_indices = @transform_2, window_bounds = array<i64: 8, 128>}, {transform_indices = @transform_3, window_bounds = array<i64: 1, 8>}]} {
    %c0_i32 = arith.constant 0 : i32
    %0 = arith.cmpi eq, %arg0, %c0_i32 : i32
    %1 = arith.extui %0 : i1 to i32
    %c0_i32_0 = arith.constant 0 : i32
    %2 = arith.cmpi ne, %1, %c0_i32_0 : i32
    scf.if %2 {
      %cst_35 = arith.constant 0.000000e+00 : f32
      %64 = vector.broadcast %cst_35 : f32 to vector<3x8x128xf32>
      %c0_36 = arith.constant 0 : index
      %c0_37 = arith.constant 0 : index
      %c0_38 = arith.constant 0 : index
      %65 = vector.load %arg5[%c0_36, %c0_37, %c0_38] : memref<3x8x128xf32, #tpu.memory_space<vmem>>, vector<3x8x128xf32>
      tpu.vector_store %arg5[%c0_36, %c0_37, %c0_38], %64 {strides = array<i32>} : memref<3x8x128xf32, #tpu.memory_space<vmem>>, vector<3x8x128xf32>,
    } else {
    }
    %c0 = arith.constant 0 : index
    %c0_1 = arith.constant 0 : index
    %3 = vector.load %arg1[%c0, %c0_1] : memref<8x128xf32, #tpu.memory_space<vmem>>, vector<8x128xf32>
    %c0_2 = arith.constant 0 : index
    %c0_3 = arith.constant 0 : index
    %4 = vector.load %arg2[%c0_2, %c0_3] : memref<8x128xf32, #tpu.memory_space<vmem>>, vector<8x128xf32>
    %5 = math.log1p %4 : vector<8x128xf32>
    %cst = arith.constant 3.000000e+00 : f32
    %6 = vector.broadcast %cst : f32 to vector<8x128xf32>
    %7 = arith.subf %5, %6 : vector<8x128xf32>
    %cst_4 = arith.constant 6.000000e+00 : f32
    %8 = vector.broadcast %cst_4 : f32 to vector<8x128xf32>
    %9 = arith.mulf %8, %7 : vector<8x128xf32>
    %10 = math.exp %9 : vector<8x128xf32>
    %cst_5 = arith.constant 1.000000e+00 : f32
    %11 = vector.broadcast %cst_5 : f32 to vector<8x128xf32>
    %12 = arith.addf %10, %11 : vector<8x128xf32>
    %cst_6 = arith.constant 5.000000e+00 : f32
    %13 = vector.broadcast %cst_6 : f32 to vector<8x128xf32>
    %14 = arith.minimumf %12, %13 : vector<8x128xf32>
    %15 = arith.subf %5, %3 : vector<8x128xf32>
    %16 = arith.mulf %15, %15 : vector<8x128xf32>
    %17 = arith.mulf %14, %16 : vector<8x128xf32>
    %c0_7 = arith.constant 0 : index
    %c0_8 = arith.constant 0 : index
    %18 = vector.load %arg3[%c0_7, %c0_8] : memref<8x128xi8, #tpu.memory_space<vmem>>, vector<8x128xi8>
    %c1_i8 = arith.constant 1 : i8
    %19 = vector.broadcast %c1_i8 : i8 to vector<8x128xi8>
    %20 = arith.andi %18, %19 : vector<8x128xi8>
    %c0_i8 = arith.constant 0 : i8
    %21 = vector.broadcast %c0_i8 : i8 to vector<8x128xi8>
    %22 = arith.cmpi ne, %20, %21 : vector<8x128xi8>
    %cst_9 = arith.constant 0.000000e+00 : f32
    %23 = vector.broadcast %cst_9 : f32 to vector<8x128xf32>
    %24 = arith.select %22, %17, %23 : vector<8x128xi1>, vector<8x128xf32>
    %25 = vector.shape_cast %24 : vector<8x128xf32> to vector<1x8x128xf32>
    %cst_10 = arith.constant dense<0.000000e+00> : vector<8x128xf32>
    %26 = vector.multi_reduction <add>, %25, %cst_10 [0] : vector<1x8x128xf32> to vector<8x128xf32>
    %c0_11 = arith.constant 0 : index
    %c0_12 = arith.constant 0 : index
    %c0_13 = arith.constant 0 : index
    %27 = vector.load %arg5[%c0_11, %c0_12, %c0_13] : memref<3x8x128xf32, #tpu.memory_space<vmem>>, vector<1x8x128xf32>
    %28 = vector.shape_cast %27 : vector<1x8x128xf32> to vector<8x128xf32>
    %29 = arith.addf %28, %26 : vector<8x128xf32>
    %c0_14 = arith.constant 0 : index
    %c0_15 = arith.constant 0 : index
    %c0_16 = arith.constant 0 : index
    %30 = vector.load %arg5[%c0_14, %c0_15, %c0_16] : memref<3x8x128xf32, #tpu.memory_space<vmem>>, vector<1x8x128xf32>
    %31 = vector.shape_cast %30 : vector<1x8x128xf32> to vector<8x128xf32>
    %32 = vector.shape_cast %29 : vector<8x128xf32> to vector<1x8x128xf32>
    tpu.vector_store %arg5[%c0_14, %c0_15, %c0_16], %32 {strides = array<i32>} : memref<3x8x128xf32, #tpu.memory_space<vmem>>, vector<1x8x128xf32>,
    %c2_i8 = arith.constant 2 : i8
    %33 = vector.broadcast %c2_i8 : i8 to vector<8x128xi8>
    %34 = arith.andi %18, %33 : vector<8x128xi8>
    %c0_i8_17 = arith.constant 0 : i8
    %35 = vector.broadcast %c0_i8_17 : i8 to vector<8x128xi8>
    %36 = arith.cmpi ne, %34, %35 : vector<8x128xi8>
    %cst_18 = arith.constant 0.000000e+00 : f32
    %37 = vector.broadcast %cst_18 : f32 to vector<8x128xf32>
    %38 = arith.select %36, %17, %37 : vector<8x128xi1>, vector<8x128xf32>
    %39 = vector.shape_cast %38 : vector<8x128xf32> to vector<1x8x128xf32>
    %cst_19 = arith.constant dense<0.000000e+00> : vector<8x128xf32>
    %40 = vector.multi_reduction <add>, %39, %cst_19 [0] : vector<1x8x128xf32> to vector<8x128xf32>
    %c1 = arith.constant 1 : index
    %c0_20 = arith.constant 0 : index
    %c0_21 = arith.constant 0 : index
    %41 = vector.load %arg5[%c1, %c0_20, %c0_21] : memref<3x8x128xf32, #tpu.memory_space<vmem>>, vector<1x8x128xf32>
    %42 = vector.shape_cast %41 : vector<1x8x128xf32> to vector<8x128xf32>
    %43 = arith.addf %42, %40 : vector<8x128xf32>
    %c1_22 = arith.constant 1 : index
    %c0_23 = arith.constant 0 : index
    %c0_24 = arith.constant 0 : index
    %44 = vector.load %arg5[%c1_22, %c0_23, %c0_24] : memref<3x8x128xf32, #tpu.memory_space<vmem>>, vector<1x8x128xf32>
    %45 = vector.shape_cast %44 : vector<1x8x128xf32> to vector<8x128xf32>
    %46 = vector.shape_cast %43 : vector<8x128xf32> to vector<1x8x128xf32>
    tpu.vector_store %arg5[%c1_22, %c0_23, %c0_24], %46 {strides = array<i32>} : memref<3x8x128xf32, #tpu.memory_space<vmem>>, vector<1x8x128xf32>,
    %c4_i8 = arith.constant 4 : i8
    %47 = vector.broadcast %c4_i8 : i8 to vector<8x128xi8>
    %48 = arith.andi %18, %47 : vector<8x128xi8>
    %c0_i8_25 = arith.constant 0 : i8
    %49 = vector.broadcast %c0_i8_25 : i8 to vector<8x128xi8>
    %50 = arith.cmpi ne, %48, %49 : vector<8x128xi8>
    %cst_26 = arith.constant 0.000000e+00 : f32
    %51 = vector.broadcast %cst_26 : f32 to vector<8x128xf32>
    %52 = arith.select %50, %17, %51 : vector<8x128xi1>, vector<8x128xf32>
    %53 = vector.shape_cast %52 : vector<8x128xf32> to vector<1x8x128xf32>
    %cst_27 = arith.constant dense<0.000000e+00> : vector<8x128xf32>
    %54 = vector.multi_reduction <add>, %53, %cst_27 [0] : vector<1x8x128xf32> to vector<8x128xf32>
    %c2 = arith.constant 2 : index
    %c0_28 = arith.constant 0 : index
    %c0_29 = arith.constant 0 : index
    %55 = vector.load %arg5[%c2, %c0_28, %c0_29] : memref<3x8x128xf32, #tpu.memory_space<vmem>>, vector<1x8x128xf32>
    %56 = vector.shape_cast %55 : vector<1x8x128xf32> to vector<8x128xf32>
    %57 = arith.addf %56, %54 : vector<8x128xf32>
    %c2_30 = arith.constant 2 : index
    %c0_31 = arith.constant 0 : index
    %c0_32 = arith.constant 0 : index
    %58 = vector.load %arg5[%c2_30, %c0_31, %c0_32] : memref<3x8x128xf32, #tpu.memory_space<vmem>>, vector<1x8x128xf32>
    %59 = vector.shape_cast %58 : vector<1x8x128xf32> to vector<8x128xf32>
    %60 = vector.shape_cast %57 : vector<8x128xf32> to vector<1x8x128xf32>
    tpu.vector_store %arg5[%c2_30, %c0_31, %c0_32], %60 {strides = array<i32>} : memref<3x8x128xf32, #tpu.memory_space<vmem>>, vector<1x8x128xf32>,
    %c0_i32_33 = arith.constant 0 : i32
    %61 = arith.cmpi eq, %arg0, %c0_i32_33 : i32
    %62 = arith.extui %61 : i1 to i32
    %c0_i32_34 = arith.constant 0 : i32
    %63 = arith.cmpi ne, %62, %c0_i32_34 : i32
    scf.if %63 {
      %c0_35 = arith.constant 0 : index
      %c0_36 = arith.constant 0 : index
      %c0_37 = arith.constant 0 : index
      %64 = vector.load %arg5[%c0_35, %c0_36, %c0_37] : memref<3x8x128xf32, #tpu.memory_space<vmem>>, vector<1x8x128xf32>
      %65 = vector.shape_cast %64 : vector<1x8x128xf32> to vector<8x128xf32>
      %66 = vector.shape_cast %65 : vector<8x128xf32> to vector<1x8x128xf32>
      %cst_38 = arith.constant dense<0.000000e+00> : vector<1xf32>
      %67 = vector.multi_reduction <add>, %66, %cst_38 [1, 2] : vector<1x8x128xf32> to vector<1xf32>
      %68 = vector.shape_cast %67 : vector<1xf32> to vector<1x1x1xf32>
      %69 = vector.extract %68[0, 0, 0] : f32 from vector<1x1x1xf32>
      %c0_39 = arith.constant 0 : index
      %c0_40 = arith.constant 0 : index
      %70 = memref.load %arg4[%c0_39, %c0_40] : memref<1x8xf32, #tpu.memory_space<smem>>
      memref.store %69, %arg4[%c0_39, %c0_40] : memref<1x8xf32, #tpu.memory_space<smem>>
      %c1_41 = arith.constant 1 : index
      %c0_42 = arith.constant 0 : index
      %c0_43 = arith.constant 0 : index
      %71 = vector.load %arg5[%c1_41, %c0_42, %c0_43] : memref<3x8x128xf32, #tpu.memory_space<vmem>>, vector<1x8x128xf32>
      %72 = vector.shape_cast %71 : vector<1x8x128xf32> to vector<8x128xf32>
      %73 = vector.shape_cast %72 : vector<8x128xf32> to vector<1x8x128xf32>
      %cst_44 = arith.constant dense<0.000000e+00> : vector<1xf32>
      %74 = vector.multi_reduction <add>, %73, %cst_44 [1, 2] : vector<1x8x128xf32> to vector<1xf32>
      %75 = vector.shape_cast %74 : vector<1xf32> to vector<1x1x1xf32>
      %76 = vector.extract %75[0, 0, 0] : f32 from vector<1x1x1xf32>
      %c0_45 = arith.constant 0 : index
      %c1_46 = arith.constant 1 : index
      %77 = memref.load %arg4[%c0_45, %c1_46] : memref<1x8xf32, #tpu.memory_space<smem>>
      memref.store %76, %arg4[%c0_45, %c1_46] : memref<1x8xf32, #tpu.memory_space<smem>>
      %c2_47 = arith.constant 2 : index
      %c0_48 = arith.constant 0 : index
      %c0_49 = arith.constant 0 : index
      %78 = vector.load %arg5[%c2_47, %c0_48, %c0_49] : memref<3x8x128xf32, #tpu.memory_space<vmem>>, vector<1x8x128xf32>
      %79 = vector.shape_cast %78 : vector<1x8x128xf32> to vector<8x128xf32>
      %80 = vector.shape_cast %79 : vector<8x128xf32> to vector<1x8x128xf32>
      %cst_50 = arith.constant dense<0.000000e+00> : vector<1xf32>
      %81 = vector.multi_reduction <add>, %80, %cst_50 [1, 2] : vector<1x8x128xf32> to vector<1xf32>
      %82 = vector.shape_cast %81 : vector<1xf32> to vector<1x1x1xf32>
      %83 = vector.extract %82[0, 0, 0] : f32 from vector<1x1x1xf32>
      %c0_51 = arith.constant 0 : index
      %c2_52 = arith.constant 2 : index
      %84 = memref.load %arg4[%c0_51, %c2_52] : memref<1x8xf32, #tpu.memory_space<smem>>
      memref.store %83, %arg4[%c0_51, %c2_52] : memref<1x8xf32, #tpu.memory_space<smem>>
      %cst_53 = arith.constant 0.000000e+00 : f32
      %c0_54 = arith.constant 0 : index
      %c3 = arith.constant 3 : index
      %85 = memref.load %arg4[%c0_54, %c3] : memref<1x8xf32, #tpu.memory_space<smem>>
      memref.store %cst_53, %arg4[%c0_54, %c3] : memref<1x8xf32, #tpu.memory_space<smem>>
      %cst_55 = arith.constant 0.000000e+00 : f32
      %c0_56 = arith.constant 0 : index
      %c4 = arith.constant 4 : index
      %86 = memref.load %arg4[%c0_56, %c4] : memref<1x8xf32, #tpu.memory_space<smem>>
      memref.store %cst_55, %arg4[%c0_56, %c4] : memref<1x8xf32, #tpu.memory_space<smem>>
      %cst_57 = arith.constant 0.000000e+00 : f32
      %c0_58 = arith.constant 0 : index
      %c5 = arith.constant 5 : index
      %87 = memref.load %arg4[%c0_58, %c5] : memref<1x8xf32, #tpu.memory_space<smem>>
      memref.store %cst_57, %arg4[%c0_58, %c5] : memref<1x8xf32, #tpu.memory_space<smem>>
      %cst_59 = arith.constant 0.000000e+00 : f32
      %c0_60 = arith.constant 0 : index
      %c6 = arith.constant 6 : index
      %88 = memref.load %arg4[%c0_60, %c6] : memref<1x8xf32, #tpu.memory_space<smem>>
      memref.store %cst_59, %arg4[%c0_60, %c6] : memref<1x8xf32, #tpu.memory_space<smem>>
      %cst_61 = arith.constant 0.000000e+00 : f32
      %c0_62 = arith.constant 0 : index
      %c7 = arith.constant 7 : index
      %89 = memref.load %arg4[%c0_62, %c7] : memref<1x8xf32, #tpu.memory_space<smem>>
      memref.store %cst_61, %arg4[%c0_62, %c7] : memref<1x8xf32, #tpu.memory_space<smem>>
    } else {
    }
    return
  }
  func.func @transform_0(%arg0: i32) -> (i32, i32) {
    %c0_i32 = arith.constant 0 : i32
    %c0_i32_0 = arith.constant 0 : i32
    return %arg0, %c0_i32 : i32, i32
  }
  func.func @transform_1(%arg0: i32) -> (i32, i32) {
    %c0_i32 = arith.constant 0 : i32
    %c0_i32_0 = arith.constant 0 : i32
    return %arg0, %c0_i32 : i32, i32
  }
  func.func @transform_2(%arg0: i32) -> (i32, i32) {
    %c0_i32 = arith.constant 0 : i32
    %c0_i32_0 = arith.constant 0 : i32
    return %arg0, %c0_i32 : i32, i32
  }
  func.func @transform_3(%arg0: i32) -> (i32, i32) {
    %c0_i32 = arith.constant 0 : i32
    %c0_i32_0 = arith.constant 0 : i32
    %c0_i32_1 = arith.constant 0 : i32
    return %c0_i32, %c0_i32_0 : i32, i32
  }
}

</mosaic_0001>

<bundles_post_ra>
// kernel: tpu_custom_call.1
= control target key start
LH: loop header
LB: loop body
LE: loop exit
PB: predicated region body
PF: predicated region fallthrough
CT: control target
= control target key end

     0   :  { %8 = vsyncpa [#allocation4], 0  ;;  %s307_s0 = inlined_call_operand.hbm [shape: f32[8,128], index: 0, kind: input, shape index: {}]   ;;  %s308_s1 = inlined_call_operand.hbm [shape: f32[8,128], index: 1, kind: input, shape index: {}]   ;;  %s309_s2 = inlined_call_operand.vmem [shape: s8[8,128], index: 2, kind: input, shape index: {}]   ;;  %s310_s3 = inlined_call_operand.hbm [shape: f32[1,8], index: 3, kind: output, shape index: {}]  }
   0x1   :  { %9 = vsyncpa [#allocation7], 0 }
   0x2   :  { %10 = vsyncpa [#allocation5], 0  ;;  %s243_s12 = smov [#allocation3]   ;;  %s244_s14 = smov [#allocation6]  }
   0x3   :  { %s17_s13 = sshll.u32 %s243_s12, 4  ;;  %s27_s15 = sshll.u32 %s244_s14, 4  ;;  %s18_s13 = int_to_ptr.vmem [resolvable:$true] %s17_s13  ;;  %s28_s15 = int_to_ptr.vmem [resolvable:$true] %s27_s15 }
   0x4   :  { %s183_s18 = scalar_lea.hbm %s307_s0, 128 }
   0x5   :  { %p184_p0 = scmp.ne.s32.totalorder %s307_s0, %s183_s18  ;;  %p187_p1 = scmp.lt.u32.totalorder %s183_s18, %s307_s0 }
   0x7   :  { %p189_p2 = pnand %p187_p1, %p184_p0 }
   0x9   :  { %192 = shalt.err (!%p189_p2)
}
   0xa   :  { %s193_s23 = scalar_lea.vmem %s18_s13, 128  ;;  %p198_p4 = scmp.lt.s32.totalorder %s18_s13, %s18_s13 }
   0xb   :  { %p194_p3 = scmp.ne.s32.totalorder %s18_s13, %s193_s23  ;;  %p199_p5 = scmp.lt.s32.totalorder %s193_s23, %s193_s23 }
   0xd   :  { %p200_p6 = por %p199_p5, %p198_p4 }
   0xf   :  { %p201_p7 = pnand %p200_p6, %p194_p3 }
  0x11   :  { %204 = shalt.err (!%p201_p7)
}
  0x12   :  { %20 = dma.hbm_to_vmem [thread:$0]  %s307_s0, 128, %s18_s13, [#allocation4]  }
  0x13   :  { %s205_s28 = scalar_lea.hbm %s308_s1, 128 }
  0x14   :  { %p206_p8 = scmp.ne.s32.totalorder %s308_s1, %s205_s28  ;;  %p209_p9 = scmp.lt.u32.totalorder %s205_s28, %s308_s1 }
  0x16   :  { %p211_p10 = pnand %p209_p9, %p206_p8 }
  0x18   :  { %214 = shalt.err (!%p211_p10)
}
  0x19   :  { %s215_s6 = scalar_lea.vmem %s28_s15, 128  ;;  %p220_p12 = scmp.lt.s32.totalorder %s28_s15, %s28_s15 }
  0x1a   :  { %p216_p11 = scmp.ne.s32.totalorder %s28_s15, %s215_s6  ;;  %p221_p13 = scmp.lt.s32.totalorder %s215_s6, %s215_s6 }
  0x1c   :  { %p222_p0 = por %p221_p13, %p220_p12 }
  0x1e   :  { %p223_p1 = pnand %p222_p0, %p216_p11 }
  0x20   :  { %226 = shalt.err (!%p223_p1)
}
  0x21   :  { %30 = dma.hbm_to_vmem [thread:$0]  %s308_s1, 128, %s28_s15, [#allocation7]  }
  0x22   :  { %237 = dma.done.wait [#allocation4], 128  }
  0x23   :  { %238 = vsyncadd [#allocation4], 4294967168 }
  0x24   :  { %239 = dma.done.wait [#allocation7], 128  }
  0x25   :  { %240 = vsyncadd [#allocation7], 4294967168  ;;  %v51_v0 = vld [vmem:[#allocation6] sm:$0xff]  ;;  %v70_v11 = vld [vmem:[%s309_s2] sm:$0x3]  ;;  %v245_v18 = vmov 0  }
  0x26   :  { %v52_v1 = vadd.f32 1.0, %v51_v0  ;;  %v55_v2 = vmul.f32 -0.5, %v51_v0  ;;  %v58_v4 = vand.u32 2147483647, %v51_v0  ;;  %v92_v13 = vand.u32 67372036, %v70_v11 }
  0x27   :  { %v71_v14 = vand.u32 16843009, %v70_v11  ;;  %v81_v15 = vand.u32 33686018, %v70_v11  ;;  %v50_v16 = vld [vmem:[#allocation3] sm:$0xff]  ;;  %s246_s1 = smov 0.0  }
  0x28   :  { %179 = vlog2.f32 %v52_v1  ;;  %v56_v3 = vadd.f32 1.0, %v55_v2  ;;  %vm59_vm0 = vcmp.lt.f32.partialorder %v58_v4, 0.0004427343  ;;  %vm93_vm1 = vnez %v92_v13  ;;  %143 = sst [smem:[#allocation8 + $0x3]] %s246_s1  ;;  %s227_s14 = scalar_lea.hbm %s310_s3, 16 }
  0x29   :  { %vm72_vm2 = vnez %v71_v14  ;;  %vm82_vm3 = vnez %v81_v15  ;;  %v94_v19 = vsel %vm93_vm1, 16843009, %v245_v18  ;;  %145 = sst [smem:[#allocation8 + $0x4]] %s246_s1  ;;  %p228_p2 = scmp.ne.s32.totalorder %s310_s3, %s227_s14 }
  0x2a   :  { %v57_v5 = vmul.f32 %v56_v3, %v51_v0  ;;  %v73_v20 = vsel %vm72_vm2, 16843009, %v245_v18  ;;  %v83_v21 = vsel %vm82_vm3, 16843009, %v245_v18  ;;  %v95_v23 = vunpack.c.0.s8 %v94_v19  ;;  %147 = sst [smem:[#allocation8 + $0x5]] %s246_s1  ;;  %p231_p3 = scmp.lt.u32.totalorder %s227_s14, %s310_s3 }
  0x2b   :  { %v74_v24 = vunpack.c.0.s8 %v73_v20  ;;  %v84_v27 = vunpack.c.0.s8 %v83_v21  ;;  %149 = sst [smem:[#allocation8 + $0x6]] %s246_s1 }
  0x2c   :  { %vm96_vm4 = vcmp.ne.s32.totalorder %v95_v23, 0  ;;  %151 = sst [smem:[#allocation8 + $0x7]] %s246_s1  ;;  %p233_p4 = pnand %p231_p3, %p228_p2 }
  0x2d   :  { %vm75_vm5 = vcmp.ne.s32.totalorder %v74_v24, 0  ;;  %vm85_vm6 = vcmp.ne.s32.totalorder %v84_v27, 0 }
  0x32   :  { %v180_v6 = vpop.eup %179 }
  0x33   :  { %v54_v7 = vmul.f32 0.6931472, %v180_v6 }
  0x35   :  { %v60_v8 = vsel %vm59_vm0, %v57_v5, %v54_v7 }
  0x36   :  { %v167_v9 = vadd.f32 -3.0, %v60_v8  ;;  %v67_v17 = vsub.f32 %v60_v8, %v50_v16 }
  0x38   :  { %v62_v10 = vmul.f32 6.0, %v167_v9  ;;  %v68_v26 = vmul.f32 %v67_v17, %v67_v17 }
  0x3a   :  { %v63_v12 = vmul.f32 1.442695, %v62_v10 }
  0x3c   :  { %181 = vpow2.f32 %v63_v12 }
  0x46   :  { %v182_v22 = vpop.eup %181 }
  0x47   :  { %v65_v25 = vadd.f32 1.0, %v182_v22 }
  0x49   :  { %v66_v28 = vmin.f32 %v65_v25, 5.0 }
  0x4b   :  { %v69_v29 = vmul.f32 %v68_v26, %v66_v28 }
  0x4d   :  { %v97_v30 = vsel %vm96_vm4, %v69_v29, 0.0  ;;  %v76_v31 = vsel %vm75_vm5, %v69_v29, 0.0  ;;  %v86_v32 = vsel %vm85_vm6, %v69_v29, 0.0 }
  0x4e   :  { %131 = vadd.xlane.f32.xlu1 %v97_v30  ;;  %107 = vadd.xlane.f32.xlu0 %v76_v31 }
  0x52   :  { %119 = vadd.xlane.f32.xlu0 %v86_v32 }
  0xdb   :  { %v132_v33 = vpop.xlane.xlu1 %131  ;;  %v108_v34 = vpop.xlane.xlu0 %107 }
  0xdc   :  { %v133_v35 = vrot.slane %v132_v33, 4  ;;  %v109_v36 = vrot.slane %v108_v34, 4 }
  0xde   :  { %v134_v37 = vadd.f32 %v133_v35, %v132_v33  ;;  %v110_v38 = vadd.f32 %v109_v36, %v108_v34 }
  0xdf   :  { %v120_v39 = vpop.xlane.xlu0 %119 }
  0xe0   :  { %v135_v40 = vrot.slane %v134_v37, 2  ;;  %v111_v41 = vrot.slane %v110_v38, 2  ;;  %v121_v42 = vrot.slane %v120_v39, 4 }
  0xe2   :  { %v122_v43 = vadd.f32 %v121_v42, %v120_v39  ;;  %v112_v44 = vadd.f32 %v111_v41, %v110_v38  ;;  %v136_v45 = vadd.f32 %v135_v40, %v134_v37 }
  0xe4   :  { %v123_v46 = vrot.slane %v122_v43, 2  ;;  %v113_v47 = vrot.slane %v112_v44, 1  ;;  %v137_v50 = vrot.slane %v136_v45, 1 }
  0xe6   :  { %v124_v48 = vadd.f32 %v123_v46, %v122_v43  ;;  %v114_v49 = vadd.f32 %v113_v47, %v112_v44  ;;  %v138_v53 = vadd.f32 %v137_v50, %v136_v45 }
  0xe8   :  { %168 = vpush %v114_v49  ;;  %v125_v51 = vrot.slane %v124_v48, 1 }
  0xea   :  { %v126_v52 = vadd.f32 %v125_v51, %v124_v48 }
  0xec   :  { %170 = vpush %v126_v52 }
  0xed   :  { %172 = vpush %v138_v53 }
 0x119   :  { %s169_s2 = spop %168 }
 0x11a   :  { %117 = sst [smem:[#allocation8]] %s169_s2 }
 0x11d   :  { %s171_s10 = spop %170 }
 0x11e   :  { %129 = sst [smem:[#allocation8 + $0x1]] %s171_s10  ;;  %s173_s11 = spop %172 }
 0x11f   :  { %141 = sst [smem:[#allocation8 + $0x2]] %s173_s11 }
 0x120   :  { %236 = shalt.err (!%p233_p4)
}
 0x121   :  { %s247_s19 = smov [#allocation8]  }
 0x122   :  { %159 = dma.smem_to_hbm %s247_s19, 16, %s310_s3, [#allocation5]  }
 0x123   :  { %241 = dma.done.wait [#allocation5], 16  }
 0x124   :  { %242 = vsyncadd [#allocation5], 4294967280 }
 0x125   :  { %163 = sfence }
 0x126   :  { %164 = vsyncpa [#allocation4], 1 }
 0x127   :  { %165 = vsyncpa [#allocation7], 1 }
 0x128   :  { %166 = vsyncpa [#allocation5], 1 }

</bundles_post_ra>
